<compile_context>
chip_gen: v5e
topology: v5e:2x2
jax: 0.10.0
libtpu: 0.0.40
codegen_flags: <defaults>
</compile_context>

<pallas_src>
import jax
import jax.numpy as jnp
from jax.experimental import pallas as pl
from jax.experimental.pallas import tpu as pltpu


_DEFAULT_TILE_S = 256  # rows per grid step; multiple of 8 (f32 sublane aligned)


def _pick_tile_s(seq_len):
    """Row tile that is either a multiple of 8 or the full extent."""
    if seq_len % 8 == 0:
        return min(_DEFAULT_TILE_S, seq_len)
    if seq_len < _DEFAULT_TILE_S:
        return seq_len  # full-extent block: allowed even if not a multiple of 8
    return _DEFAULT_TILE_S


def _make_gather_kernel(tile_s, rem, num_tiles):
    """DMA row-slice gather: table rows [start + i*tile_s, ...) -> output tile i."""

    def kernel(start_ref, emb_hbm, out_ref, copy_sem):
        # start_ref: (1,) int32 scalar-prefetch ref in SMEM
        # emb_hbm:   (seq_len_max, C) embedding table, left in HBM (pl.ANY)
        # out_ref:   (tile_s, C) VMEM block of the output (pipelined by BlockSpec)
        i = pl.program_id(0)
        row0 = start_ref[0] + i * tile_s

        if rem == 0:
            cp = pltpu.make_async_copy(
                emb_hbm.at[pl.ds(row0, tile_s), :], out_ref, copy_sem)
            cp.start()
            cp.wait()
        else:
            @pl.when(i < num_tiles - 1)
            def _full_tile():
                cp = pltpu.make_async_copy(
                    emb_hbm.at[pl.ds(row0, tile_s), :], out_ref, copy_sem)
                cp.start()
                cp.wait()

            @pl.when(i == num_tiles - 1)
            def _partial_tile():
                # `rem` is a static Python int, so the DMA size stays static.
                cp = pltpu.make_async_copy(
                    emb_hbm.at[pl.ds(row0, rem), :],
                    out_ref.at[pl.ds(0, rem), :],
                    copy_sem)
                cp.start()
                cp.wait()

    return kernel


def _gather_embeddings(start, seq_len, emb_weight):
    """Return emb_weight[start : start + seq_len, :] via a Pallas DMA kernel."""
    seq_len_max, channels = emb_weight.shape
    tile_s = _pick_tile_s(seq_len)
    num_tiles = (seq_len + tile_s - 1) // tile_s
    rem = seq_len % tile_s

    start_arr = jnp.asarray(start, dtype=jnp.int32).reshape((1,))

    grid_spec = pltpu.PrefetchScalarGridSpec(
        num_scalar_prefetch=1,
        grid=(num_tiles,),
        in_specs=[pl.BlockSpec(memory_space=pl.ANY)],  # table stays in HBM
        out_specs=pl.BlockSpec((tile_s, channels), lambda i, start_ref: (i, 0)),
        scratch_shapes=[pltpu.SemaphoreType.DMA],
    )

    return pl.pallas_call(
        _make_gather_kernel(tile_s, rem, num_tiles),
        out_shape=jax.ShapeDtypeStruct((seq_len, channels), emb_weight.dtype),
        grid_spec=grid_spec,
        compiler_params=pltpu.CompilerParams(
            dimension_semantics=("arbitrary",)),
    )(start_arr, emb_weight)


class LearnedPositionEmbeddings:
    """JAX/Pallas port of TTS.tts.layers.xtts.gpt_encoder_eren.LearnedPositionEmbeddings."""

    def __init__(self, seq_len, model_channels, init_std=0.02, relative=False, *, key):
        # nn.Embedding(seq_len, model_channels) with N(0, init_std) init.
        self.emb_weight = init_std * jax.random.normal(
            key, (seq_len, model_channels), dtype=jnp.float32)
        self.relative = relative
        self.seq_len_max = seq_len

    def forward(self, x, *, key=None):
        seq_len = x.shape[1]
        if self.relative:
            # torch.randint(seq_len, (1,)) analogue via an explicit key.
            if key is None:
                key = jax.random.PRNGKey(0)
            start = jax.random.randint(key, (), 0, seq_len, dtype=jnp.int32)
            # TODO(synk): PyTorch nn.Embedding raises on out-of-range indices; we
            # clamp so start + seq_len <= num_embeddings (keeps the DMA in bounds).
            start = jnp.clip(start, 0, max(self.seq_len_max - seq_len, 0))
        else:
            start = 0
        return _gather_embeddings(start, seq_len, self.emb_weight)

    __call__ = forward

    def get_fixed_embedding(self, ind, dev=None):
        del dev  # device handled by JAX
        return _gather_embeddings(ind, 1, self.emb_weight)[None, ...]  # (1, 1, C)


if __name__ == "__main__":
    key = jax.random.PRNGKey(0)
    k_emb, k_emb_rel, k_x, k_start = jax.random.split(key, 4)

    seq_len_max = 16      # nn.Embedding num_embeddings
    model_channels = 32
    batch, seq_len = 2, 8

    module = LearnedPositionEmbeddings(seq_len_max, model_channels, key=k_emb)

    # x is only used for its shape[1] (token ids in the GPT encoder).
    x = jax.random.randint(k_x, (batch, seq_len), 0, seq_len_max, dtype=jnp.int32)

    # --- non-relative forward ---
    out = jax.block_until_ready(module(x))
    ref = module.emb_weight[:seq_len]
    assert out.shape == (seq_len, model_channels)
    assert jnp.allclose(out, ref, atol=0.0, rtol=0.0)  # pure copy -> exact

    # --- relative forward (dynamic scalar-prefetched start) ---
    module_rel = LearnedPositionEmbeddings(
        seq_len_max, model_channels, relative=True, key=k_emb_rel)
    out_rel = jax.block_until_ready(module_rel(x, key=k_start))
    start_ref_val = int(jnp.clip(
        jax.random.randint(k_start, (), 0, seq_len, dtype=jnp.int32),
        0, seq_len_max - seq_len))
    ref_rel = module_rel.emb_weight[start_ref_val:start_ref_val + seq_len]
    assert out_rel.shape == (seq_len, model_channels)
    assert jnp.allclose(out_rel, ref_rel, atol=0.0, rtol=0.0)

    # --- fixed-embedding path (seq_len = 1) ---
    fixed = jax.block_until_ready(module.get_fixed_embedding(3))
    assert fixed.shape == (1, 1, model_channels)
    assert jnp.allclose(fixed[0, 0], module.emb_weight[3], atol=0.0, rtol=0.0)

    print("KERNEL_OK")
</pallas_src>

<mosaic_0001>
module attributes {stable_mosaic.version = 11 : i64} {
  func.func @kernel(%arg0: i32, %arg1: memref<1xi32, #tpu.memory_space<smem>>, %arg2: memref<16x32xf32, #tpu.memory_space<any>>, %arg3: memref<8x32xf32, #tpu.memory_space<vmem>>, %arg4: memref<!tpu.dma_semaphore, #tpu.memory_space<semaphore_mem>>) attributes {dimension_semantics = [#tpu.dimension_semantics<arbitrary>], iteration_bounds = array<i64: 1>, scalar_prefetch = 1 : i64, scratch_operands = 1 : i64, tpu.core_type = #tpu.core_type<tc>, window_params = [{}, {transform_indices = @transform_1, window_bounds = array<i64: 8, 32>}]} {
    %c0 = arith.constant 0 : index
    %0 = memref.load %arg1[%c0] : memref<1xi32, #tpu.memory_space<smem>>
    %c8_i32 = arith.constant 8 : i32
    %1 = arith.muli %arg0, %c8_i32 : i32
    %2 = arith.addi %0, %1 : i32
    %c0_i32 = arith.constant 0 : i32
    %3 = tpu.memref_slice %arg2[%2, %c0_i32] : memref<16x32xf32, #tpu.memory_space<any>> -> memref<8x32xf32, #tpu.memory_space<any>>
    tpu.enqueue_dma source(%3 : memref<8x32xf32, #tpu.memory_space<any>>) target(%arg3 : memref<8x32xf32, #tpu.memory_space<vmem>>) target_semaphore(%arg4 : memref<!tpu.dma_semaphore, #tpu.memory_space<semaphore_mem>>)
    %c0_i32_0 = arith.constant 0 : i32
    %4 = tpu.memref_slice %arg2[%2, %c0_i32_0] : memref<16x32xf32, #tpu.memory_space<any>> -> memref<8x32xf32, #tpu.memory_space<any>>
    tpu.wait_dma2 semaphore(%arg4 : memref<!tpu.dma_semaphore, #tpu.memory_space<semaphore_mem>>) src(%4 : memref<8x32xf32, #tpu.memory_space<any>>) dst(%arg3 : memref<8x32xf32, #tpu.memory_space<vmem>>)
    return
  }
  func.func @transform_1(%arg0: i32, %arg1: memref<1xi32, #tpu.memory_space<smem>>) -> (i32, i32) {
    %c0_i32 = arith.constant 0 : i32
    %c0_i32_0 = arith.constant 0 : i32
    return %arg0, %c0_i32 : i32, i32
  }
}

</mosaic_0001>

<bundles_post_ra>
// kernel: tpu_custom_call.1
= control target key start
LH: loop header
LB: loop body
LE: loop exit
PB: predicated region body
PF: predicated region fallthrough
CT: control target
= control target key end

     0   :  { %8 = vsyncpa [#allocation6], 0  ;;  %s106_s15 = smov [#allocation5]   ;;  %s137_s0 = inlined_call_operand.<no memory space> [shape: s32[1], index: 0, kind: input, shape index: {}]   ;;  %s138_s1 = inlined_call_operand.hbm [shape: f32[16,32], index: 1, kind: input, shape index: {}]   ;;  %s139_s2 = inlined_call_operand.hbm [shape: f32[8,32], index: 2, kind: output, shape index: {}]  }
   0x1   :  { %s12_s13 = scalar_lea.hbm %s138_s1, %s137_s0  ;;  %s22_s16 = sshll.u32 %s106_s15, 4  ;;  %s23_s16 = int_to_ptr.vmem [resolvable:$true] %s22_s16 }
   0x2   :  { %s20_s14 = sshll.u32 %s12_s13, 4  ;;  %s58_s21 = scalar_lea.hbm %s138_s1, 16  ;;  %s21_s14 = int_to_ptr.hbm [resolvable:$true] %s20_s14 }
   0x3   :  { %s54_s17 = sshra.s32 %s21_s14, 4  ;;  %s55_s17 = int_to_ptr.hbm [resolvable:$true] %s54_s17 }
   0x4   :  { %s56_s18 = scalar_lea.hbm %s55_s17, 8  ;;  %p59_p1 = scmp.lt.s32.totalorder %s55_s17, %s138_s1 }
   0x5   :  { %p57_p0 = scmp.ne.s32.totalorder %s55_s17, %s56_s18  ;;  %p60_p2 = scmp.lt.s32.totalorder %s58_s21, %s56_s18 }
   0x7   :  { %p61_p3 = por %p60_p2, %p59_p1 }
   0x9   :  { %p62_p4 = pnand %p61_p3, %p57_p0 }
   0xb   :  { %65 = shalt.err (!%p62_p4)  }
   0xc   :  { %25 = dma.hbm_to_vmem [thread:$0]  %s21_s14, 128, %s23_s16, [#allocation2] }
   0xd   :  { %102 = dma.done.wait [#allocation2], 128 }
   0xe   :  { %103 = vsyncadd [#allocation2], 4294967168  ;;  %s36_s25 = sshll.u32 %s139_s2, 4  ;;  %s37_s25 = int_to_ptr.hbm [resolvable:$true] %s36_s25 }
   0xf   :  { %39 = dma.vmem_to_hbm [thread:$0]  %s23_s16, 128, %s37_s25, [#allocation6]  }
  0x10   :  { %104 = dma.done.wait [#allocation6], 128  }
  0x11   :  { %105 = vsyncadd [#allocation6], 4294967168 }
  0x12   :  { %44 = vsyncpa [#allocation6], 1 }
  0x13   :  { %45 = vsyncmov [#allocation2] }
  0x16   :  { %s46_s26 = vpop.sfrf %45 }
  0x17   :  { %p52_p5 = scmp.ne.s32.totalorder %s46_s26, 0 }
  0x19   :  { %50 = shalt.err (%p52_p5)  }

</bundles_post_ra>
